<compile_context>
chip_gen: v7x
topology: tpu7x:2x2x1
jax: 0.10.0
libtpu: 0.0.40
codegen_flags: <defaults>
</compile_context>

<pallas_src>
import math

import jax
import jax.numpy as jnp
from jax import lax
from jax.experimental import pallas as pl
from jax.experimental.pallas import tpu as pltpu


def _round_up(x: int, m: int) -> int:
    return ((x + m - 1) // m) * m


def _pad_to(x, shape):
    pads = [(0, t - s) for s, t in zip(x.shape, shape)]
    if all(p == (0, 0) for p in pads):
        return x
    return jnp.pad(x, pads)


# Finite "masked out" logit for zero-padded key columns (avoids exp(-inf - -inf) NaN).
_NEG_BIG = -1e30


def _make_kernel(*, inv_sqrt_dk, sk, tk, has_mask, mask_select, mask_kpad,
                 qk_dtype, pv_dtype):
    """Build the flash-attention kernel (variant with or without a mask input)."""

    def kernel(*refs):
        if has_mask:
            q_ref, k_ref, v_ref, mask_ref, o_ref, m_sc, l_sc, acc_sc, qs_sc = refs
        else:
            q_ref, k_ref, v_ref, o_ref, m_sc, l_sc, acc_sc, qs_sc = refs
            mask_ref = None

        kv = pl.program_id(2)

        @pl.when(kv == 0)
        def _init():
            m_sc[...] = jnp.full_like(m_sc, -jnp.inf)
            l_sc[...] = jnp.zeros_like(l_sc)
            acc_sc[...] = jnp.zeros_like(acc_sc)
            # Fold 1/sqrt(dk) into Q once per (b, qi) tile (Q is resident across kv),
            # instead of re-multiplying every KV step.
            qs_sc[...] = (q_ref[0] * inv_sqrt_dk).astype(qs_sc.dtype)

        q = qs_sc[...]                              # (TQ, Dp), MXU operand dtype
        k = k_ref[0].astype(qk_dtype)               # (TK, Dp)

        # NT matmul on the MXU: contract head dims directly (no k.T / XLU transpose).
        s = lax.dot_general(q, k, (((1,), (1,)), ((), ())),
                            preferred_element_type=jnp.float32)   # (TQ, TK) f32

        if has_mask:
            m = mask_ref[0]                         # (TQm, TKm), broadcasts vs (TQ, TK)
            if mask_select:
                # boolean mask (int8 stream): one compare + one select
                s = jnp.where(m != 0, s + jnp.float32(-1e9), s)
            else:
                # exact reference semantics for arbitrary-valued masks
                s = s + m.astype(jnp.float32) * jnp.float32(-1e9)

        if mask_kpad:
            # Mask zero-padded key columns in-kernel (no dense pad mask in HBM).
            key_idx = kv * tk + lax.broadcasted_iota(jnp.int32, s.shape, 1)
            s = jnp.where(key_idx < sk, s, _NEG_BIG)

        # Online softmax update; statistics stay f32 on every chip.
        m_prev = m_sc[...]                                          # (TQ, 1)
        m_new = jnp.maximum(m_prev, jnp.max(s, axis=-1, keepdims=True))
        alpha = jnp.exp(m_prev - m_new)
        p = jnp.exp(s - m_new)                                      # (TQ, TK) f32
        l_sc[...] = alpha * l_sc[...] + jnp.sum(p, axis=-1, keepdims=True)
        acc_sc[...] = alpha * acc_sc[...] + jnp.dot(
            p.astype(pv_dtype), v_ref[0].astype(pv_dtype),
            preferred_element_type=jnp.float32)
        m_sc[...] = m_new

        @pl.when(kv == pl.num_programs(2) - 1)
        def _finish():
            # Normalize the (TQ, Dv) accumulator once; approx reciprocal -> EUP slot.
            inv_l = pl.reciprocal(l_sc[...], approx=True)
            o_ref[0] = (acc_sc[...] * inv_l).astype(o_ref.dtype)

    return kernel


def dot_product_attention(queries, keys, values, dk, mask=None, *, use_bf16_mxu=None):
    """Pallas TPU implementation of DotProductAttention.forward."""
    queries = jnp.asarray(queries)
    keys = jnp.asarray(keys)
    values = jnp.asarray(values)

    B, Sq, D = queries.shape
    _, Sk, _ = keys.shape
    Dv = values.shape[-1]
    out_dtype = jnp.result_type(queries.dtype, values.dtype)

    # MXU operand dtype policy: bf16 inputs use the native bf16 MXU path; f32 inputs
    # keep f32 matmuls (reference semantics) unless the caller opts into bf16 compute.
    if use_bf16_mxu is None:
        use_bf16_mxu = jnp.dtype(queries.dtype).itemsize <= 2
    qk_dtype = jnp.bfloat16 if use_bf16_mxu else queries.dtype
    pv_dtype = jnp.bfloat16 if use_bf16_mxu else values.dtype

    # Tile plan: sublane multiple depends on dtype packing (8 f32 / 16 bf16 / 32 int8);
    # lane-aligned Sk tiles; lane-dense head dims.
    sub = max(8, 32 // jnp.dtype(queries.dtype).itemsize)
    TQ = min(256, _round_up(Sq, sub))
    TK = min(512, _round_up(Sk, 128))

    # v7x megacore: guarantee >= 2 items of "parallel" grid work when possible.
    if B * ((Sq + TQ - 1) // TQ) < 2 and (Sq + sub - 1) // sub >= 2:
        TQ = _round_up((Sq + 1) // 2, sub)

    Dp = _round_up(D, 128)
    Dvp = _round_up(Dv, 128)
    Sq_p = _round_up(Sq, TQ)
    Sk_p = _round_up(Sk, TK)

    q = _pad_to(queries, (B, Sq_p, Dp))
    k = _pad_to(keys, (B, Sk_p, Dp))
    v = _pad_to(values, (B, Sk_p, Dvp))

    has_mask = mask is not None
    inputs = [q, k, v]
    in_specs = [
        pl.BlockSpec((1, TQ, Dp), lambda b, qi, ki: (b, qi, 0)),
        pl.BlockSpec((1, TK, Dp), lambda b, qi, ki: (b, ki, 0)),
        pl.BlockSpec((1, TK, Dvp), lambda b, qi, ki: (b, ki, 0)),
    ]

    mask_select = False
    mask_bytes = 0
    if has_mask:
        m = jnp.asarray(mask)
        while m.ndim < 3:
            m = m[None]
        if (m.ndim != 3 or m.shape[0] not in (1, B)
                or m.shape[1] not in (1, Sq) or m.shape[2] not in (1, Sk)):
            m = jnp.broadcast_to(jnp.asarray(mask), (B, Sq, Sk))  # rare fallback
        if m.dtype == jnp.bool_:
            m = m.astype(jnp.int8)          # 1 byte/element HBM stream, select in-kernel
            mask_select = True
        # Pad only full-size dims that actually need padding (padded cols/rows are
        # handled by the in-kernel key-padding mask / final slice).
        m = _pad_to(m, (m.shape[0],
                        Sq_p if m.shape[1] == Sq else m.shape[1],
                        Sk_p if m.shape[2] == Sk else m.shape[2]))
        mb = m.shape[0] != 1
        mq = m.shape[1] != 1
        mk = m.shape[2] != 1
        TQm = TQ if mq else 1
        TKm = TK if mk else 1
        inputs.append(m)
        in_specs.append(pl.BlockSpec(
            (1, TQm, TKm),
            lambda b, qi, ki, _mb=mb, _mq=mq, _mk=mk: (
                b if _mb else 0, qi if _mq else 0, ki if _mk else 0)))
        mask_bytes = 2 * TQm * TKm * m.dtype.itemsize

    kernel = _make_kernel(
        inv_sqrt_dk=1.0 / math.sqrt(float(dk)),
        sk=Sk, tk=TK, has_mask=has_mask, mask_select=mask_select,
        mask_kpad=(Sk_p != Sk), qk_dtype=qk_dtype, pv_dtype=pv_dtype)

    # VMEM budget from the tile plan: double-buffered inputs, resident output,
    # scratch, and the (TQ, TK) f32 score/prob intermediates; capped with headroom
    # below the physical VMEM of the current chip (64 MiB v7x / 128 MiB v5e-v6e).
    isz = lambda dt: jnp.dtype(dt).itemsize
    est = 2 * (TQ * Dp * isz(q.dtype) + TK * Dp * isz(k.dtype) + TK * Dvp * isz(v.dtype))
    est += mask_bytes
    est += 2 * TQ * Dvp * isz(out_dtype)
    est += (2 * TQ * 128 + TQ * Dvp) * 4            # m, l (lane-padded), acc scratch
    est += TQ * Dp * isz(qk_dtype)                  # scaled-Q scratch
    est += 2 * TQ * TK * 4                          # s and p f32 intermediates
    try:
        cap = int(getattr(pltpu.get_tpu_info(), "vmem_capacity_bytes", 0)) or (64 << 20)
    except Exception:
        cap = 64 << 20
    vmem_limit = int(min(int(0.8 * cap), max(32 << 20, 4 * est)))

    grid = (B, Sq_p // TQ, Sk_p // TK)

    out = pl.pallas_call(
        kernel,
        out_shape=jax.ShapeDtypeStruct((B, Sq_p, Dvp), out_dtype),
        grid_spec=pltpu.PrefetchScalarGridSpec(
            num_scalar_prefetch=0,
            grid=grid,
            in_specs=in_specs,
            out_specs=pl.BlockSpec((1, TQ, Dvp), lambda b, qi, ki: (b, qi, 0)),
            scratch_shapes=[
                pltpu.VMEM((TQ, 1), jnp.float32),     # running max  m_i
                pltpu.VMEM((TQ, 1), jnp.float32),     # running sum  l_i
                pltpu.VMEM((TQ, Dvp), jnp.float32),   # output accumulator
                pltpu.VMEM((TQ, Dp), qk_dtype),       # pre-scaled Q tile
            ],
        ),
        compiler_params=pltpu.CompilerParams(
            dimension_semantics=("parallel", "parallel", "arbitrary"),
            vmem_limit_bytes=vmem_limit),
    )(*inputs)

    if (Sq_p, Dvp) == (Sq, Dv):
        return out                         # aligned fast path: no extra slice copy
    return out[:, :Sq, :Dv]


def _reference(queries, keys, values, dk, mask=None):
    q = queries.astype(jnp.float32)
    k = keys.astype(jnp.float32)
    v = values.astype(jnp.float32)
    score = jnp.matmul(q, jnp.swapaxes(k, -1, -2)) / jnp.sqrt(jnp.float32(dk))
    if mask is not None:
        score = score + mask.astype(jnp.float32) * (-1e9)
    score = jax.nn.softmax(score, axis=-1)
    return jnp.matmul(score, v)


if __name__ == "__main__":
    key = jax.random.PRNGKey(0)
    kq, kk_, kv_, km = jax.random.split(key, 4)

    # Small shapes consistent with the module.
    B, Sq, Sk, D, Dv = 2, 8, 8, 32, 32
    queries = jax.random.normal(kq, (B, Sq, D), dtype=jnp.float32)
    keys = jax.random.normal(kk_, (B, Sk, D), dtype=jnp.float32)
    values = jax.random.normal(kv_, (B, Sk, Dv), dtype=jnp.float32)
    bool_mask = jax.random.uniform(km, (B, Sq, Sk)) > 0.7

    # 1) boolean mask -> int8 HBM stream + in-kernel compare/select.
    out = jax.block_until_ready(
        dot_product_attention(queries, keys, values, dk=D, mask=bool_mask))
    ref = _reference(queries, keys, values, D, bool_mask)
    assert out.shape == (B, Sq, Dv)
    assert jnp.allclose(out, ref, atol=2e-3, rtol=2e-3)

    # 2) float 0/1 mask -> exact additive semantics preserved.
    out_f = jax.block_until_ready(
        dot_product_attention(queries, keys, values, dk=D,
                              mask=bool_mask.astype(jnp.float32)))
    assert jnp.allclose(out_f, ref, atol=2e-3, rtol=2e-3)

    # 3) mask=None path: separate kernel variant with no mask input / no mask DMA.
    out_nm = jax.block_until_ready(
        dot_product_attention(queries, keys, values, dk=D, mask=None))
    ref_nm = _reference(queries, keys, values, D, None)
    assert jnp.allclose(out_nm, ref_nm, atol=2e-3, rtol=2e-3)

    # 4) Larger, non-aligned shapes with a batch-broadcast boolean mask:
    #    exercises Sq/Sk tiling, online softmax, in-kernel key-padding masking,
    #    D/Dv lane padding, and the no-broadcast mask index_map.
    B2, Sq2, Sk2, D2, Dv2 = 2, 136, 300, 40, 24
    k1, k2, k3, k4 = jax.random.split(jax.random.PRNGKey(1), 4)
    q2 = jax.random.normal(k1, (B2, Sq2, D2), dtype=jnp.float32)
    key2 = jax.random.normal(k2, (B2, Sk2, D2), dtype=jnp.float32)
    v2 = jax.random.normal(k3, (B2, Sk2, Dv2), dtype=jnp.float32)
    m2 = jax.random.uniform(k4, (1, Sq2, Sk2)) > 0.8        # batch-broadcast mask

    out2 = jax.block_until_ready(
        dot_product_attention(q2, key2, v2, dk=D2, mask=m2))
    ref2 = _reference(q2, key2, v2, D2, jnp.broadcast_to(m2, (B2, Sq2, Sk2)))
    assert jnp.allclose(out2, ref2, atol=2e-3, rtol=2e-3)

    # 5) bf16 inputs exercise the native bf16 MXU path (looser tolerance).
    qb, kb, vb = (x.astype(jnp.bfloat16) for x in (q2, key2, v2))
    out_b = jax.block_until_ready(
        dot_product_attention(qb, kb, vb, dk=D2, mask=m2))
    ref_b = _reference(qb, kb, vb, D2, jnp.broadcast_to(m2, (B2, Sq2, Sk2)))
    assert jnp.allclose(out_b.astype(jnp.float32), ref_b, atol=5e-2, rtol=5e-2)

    print("KERNEL_OK")
</pallas_src>

<mosaic_0001>
module attributes {stable_mosaic.version = 11 : i64} {
  func.func @kernel(%arg0: i32, %arg1: i32, %arg2: i32, %arg3: memref<1x8x128xf32, #tpu.memory_space<vmem>>, %arg4: memref<1x128x128xf32, #tpu.memory_space<vmem>>, %arg5: memref<1x128x128xf32, #tpu.memory_space<vmem>>, %arg6: memref<1x8x128xi8, #tpu.memory_space<vmem>>, %arg7: memref<1x8x128xf32, #tpu.memory_space<vmem>>, %arg8: memref<8x1xf32, #tpu.memory_space<vmem>>, %arg9: memref<8x1xf32, #tpu.memory_space<vmem>>, %arg10: memref<8x128xf32, #tpu.memory_space<vmem>>, %arg11: memref<8x128xf32, #tpu.memory_space<vmem>>) attributes {dimension_semantics = [#tpu.dimension_semantics<parallel>, #tpu.dimension_semantics<parallel>, #tpu.dimension_semantics<arbitrary>], iteration_bounds = array<i64: 2, 1, 1>, scalar_prefetch = 0 : i64, scratch_operands = 4 : i64, tpu.core_type = #tpu.core_type<tc>, window_params = [{transform_indices = @transform_0, window_bounds = array<i64: 1, 8, 128>}, {transform_indices = @transform_1, window_bounds = array<i64: 1, 128, 128>}, {transform_indices = @transform_2, window_bounds = array<i64: 1, 128, 128>}, {transform_indices = @transform_3, window_bounds = array<i64: 1, 8, 128>}, {transform_indices = @transform_4, window_bounds = array<i64: 1, 8, 128>}]} {
    %c0_i32 = arith.constant 0 : i32
    %0 = arith.cmpi eq, %arg2, %c0_i32 : i32
    %1 = arith.extui %0 : i1 to i32
    %c0_i32_0 = arith.constant 0 : i32
    %2 = arith.cmpi ne, %1, %c0_i32_0 : i32
    scf.if %2 {
      %cst_30 = arith.constant 0xFF800000 : f32
      %49 = vector.broadcast %cst_30 : f32 to vector<8x1xf32>
      %c0_31 = arith.constant 0 : index
      %c0_32 = arith.constant 0 : index
      %50 = vector.load %arg8[%c0_31, %c0_32] : memref<8x1xf32, #tpu.memory_space<vmem>>, vector<8x1xf32>
      tpu.vector_store %arg8[%c0_31, %c0_32], %49 {strides = array<i32>} : memref<8x1xf32, #tpu.memory_space<vmem>>, vector<8x1xf32>,
      %cst_33 = arith.constant 0.000000e+00 : f32
      %51 = vector.broadcast %cst_33 : f32 to vector<8x1xf32>
      %c0_34 = arith.constant 0 : index
      %c0_35 = arith.constant 0 : index
      %52 = vector.load %arg9[%c0_34, %c0_35] : memref<8x1xf32, #tpu.memory_space<vmem>>, vector<8x1xf32>
      tpu.vector_store %arg9[%c0_34, %c0_35], %51 {strides = array<i32>} : memref<8x1xf32, #tpu.memory_space<vmem>>, vector<8x1xf32>,
      %cst_36 = arith.constant 0.000000e+00 : f32
      %53 = vector.broadcast %cst_36 : f32 to vector<8x128xf32>
      %c0_37 = arith.constant 0 : index
      %c0_38 = arith.constant 0 : index
      %54 = vector.load %arg10[%c0_37, %c0_38] : memref<8x128xf32, #tpu.memory_space<vmem>>, vector<8x128xf32>
      tpu.vector_store %arg10[%c0_37, %c0_38], %53 {strides = array<i32>} : memref<8x128xf32, #tpu.memory_space<vmem>>, vector<8x128xf32>,
      %c0_39 = arith.constant 0 : index
      %c0_40 = arith.constant 0 : index
      %c0_41 = arith.constant 0 : index
      %55 = vector.load %arg3[%c0_39, %c0_40, %c0_41] : memref<1x8x128xf32, #tpu.memory_space<vmem>>, vector<1x8x128xf32>
      %56 = vector.shape_cast %55 : vector<1x8x128xf32> to vector<8x128xf32>
      %cst_42 = arith.constant 0.176776692 : f32
      %57 = vector.broadcast %cst_42 : f32 to vector<8x128xf32>
      %58 = arith.mulf %56, %57 : vector<8x128xf32>
      %c0_43 = arith.constant 0 : index
      %c0_44 = arith.constant 0 : index
      %59 = vector.load %arg11[%c0_43, %c0_44] : memref<8x128xf32, #tpu.memory_space<vmem>>, vector<8x128xf32>
      tpu.vector_store %arg11[%c0_43, %c0_44], %58 {strides = array<i32>} : memref<8x128xf32, #tpu.memory_space<vmem>>, vector<8x128xf32>,
    } else {
    }
    %c0 = arith.constant 0 : index
    %c0_1 = arith.constant 0 : index
    %3 = vector.load %arg11[%c0, %c0_1] : memref<8x128xf32, #tpu.memory_space<vmem>>, vector<8x128xf32>
    %c0_2 = arith.constant 0 : index
    %c0_3 = arith.constant 0 : index
    %c0_4 = arith.constant 0 : index
    %4 = vector.load %arg4[%c0_2, %c0_3, %c0_4] : memref<1x128x128xf32, #tpu.memory_space<vmem>>, vector<1x128x128xf32>
    %5 = vector.shape_cast %4 : vector<1x128x128xf32> to vector<128x128xf32>
    %cst = arith.constant dense<0.000000e+00> : vector<8x128xf32>
    %6 = tpu.matmul %3, %5, %cst {dimension_numbers = #tpu.dot_dimension_numbers<[1], [1], [0], [0], [0, 0, 1, 0], [], []>} : vector<8x128xf32>, vector<128x128xf32>, vector<8x128xf32> -> vector<8x128xf32>
    %c0_5 = arith.constant 0 : index
    %c0_6 = arith.constant 0 : index
    %c0_7 = arith.constant 0 : index
    %7 = vector.load %arg6[%c0_5, %c0_6, %c0_7] : memref<1x8x128xi8, #tpu.memory_space<vmem>>, vector<1x8x128xi8>
    %8 = vector.shape_cast %7 : vector<1x8x128xi8> to vector<8x128xi8>
    %c0_i8 = arith.constant 0 : i8
    %9 = vector.broadcast %c0_i8 : i8 to vector<8x128xi8>
    %10 = arith.cmpi ne, %8, %9 : vector<8x128xi8>
    %cst_8 = arith.constant -1.000000e+09 : f32
    %11 = vector.broadcast %cst_8 : f32 to vector<8x128xf32>
    %12 = arith.addf %6, %11 : vector<8x128xf32>
    %13 = arith.select %10, %12, %6 : vector<8x128xi1>, vector<8x128xf32>
    %c128_i32 = arith.constant 128 : i32
    %14 = arith.muli %arg2, %c128_i32 : i32
    %15 = tpu.iota {dimensions = array<i32: 1>} : vector<8x128xi32>
    %16 = vector.broadcast %14 : i32 to vector<8x128xi32>
    %17 = arith.addi %16, %15 : vector<8x128xi32>
    %c8_i32 = arith.constant 8 : i32
    %18 = vector.broadcast %c8_i32 : i32 to vector<8x128xi32>
    %19 = arith.cmpi slt, %17, %18 : vector<8x128xi32>
    %cst_9 = arith.constant -1.000000e+30 : f32
    %20 = vector.broadcast %cst_9 : f32 to vector<8x128xf32>
    %21 = arith.select %19, %13, %20 : vector<8x128xi1>, vector<8x128xf32>
    %c0_10 = arith.constant 0 : index
    %c0_11 = arith.constant 0 : index
    %22 = vector.load %arg8[%c0_10, %c0_11] : memref<8x1xf32, #tpu.memory_space<vmem>>, vector<8x1xf32>
    %cst_12 = arith.constant dense<0xFF800000> : vector<8xf32>
    %23 = vector.multi_reduction <maximumf>, %21, %cst_12 [1] : vector<8x128xf32> to vector<8xf32>
    %24 = vector.shape_cast %23 : vector<8xf32> to vector<8x1xf32>
    %25 = arith.maximumf %22, %24 : vector<8x1xf32>
    %26 = arith.subf %22, %25 : vector<8x1xf32>
    %27 = math.exp %26 : vector<8x1xf32>
    %28 = vector.broadcast %25 : vector<8x1xf32> to vector<8x128xf32>
    %29 = arith.subf %21, %28 : vector<8x128xf32>
    %30 = math.exp %29 : vector<8x128xf32>
    %c0_13 = arith.constant 0 : index
    %c0_14 = arith.constant 0 : index
    %31 = vector.load %arg9[%c0_13, %c0_14] : memref<8x1xf32, #tpu.memory_space<vmem>>, vector<8x1xf32>
    %32 = arith.mulf %27, %31 : vector<8x1xf32>
    %cst_15 = arith.constant dense<0.000000e+00> : vector<8xf32>
    %33 = vector.multi_reduction <add>, %30, %cst_15 [1] : vector<8x128xf32> to vector<8xf32>
    %34 = vector.shape_cast %33 : vector<8xf32> to vector<8x1xf32>
    %35 = arith.addf %32, %34 : vector<8x1xf32>
    %c0_16 = arith.constant 0 : index
    %c0_17 = arith.constant 0 : index
    %36 = vector.load %arg9[%c0_16, %c0_17] : memref<8x1xf32, #tpu.memory_space<vmem>>, vector<8x1xf32>
    tpu.vector_store %arg9[%c0_16, %c0_17], %35 {strides = array<i32>} : memref<8x1xf32, #tpu.memory_space<vmem>>, vector<8x1xf32>,
    %c0_18 = arith.constant 0 : index
    %c0_19 = arith.constant 0 : index
    %37 = vector.load %arg10[%c0_18, %c0_19] : memref<8x128xf32, #tpu.memory_space<vmem>>, vector<8x128xf32>
    %38 = vector.broadcast %27 : vector<8x1xf32> to vector<8x128xf32>
    %39 = arith.mulf %38, %37 : vector<8x128xf32>
    %c0_20 = arith.constant 0 : index
    %c0_21 = arith.constant 0 : index
    %c0_22 = arith.constant 0 : index
    %40 = vector.load %arg5[%c0_20, %c0_21, %c0_22] : memref<1x128x128xf32, #tpu.memory_space<vmem>>, vector<1x128x128xf32>
    %41 = vector.shape_cast %40 : vector<1x128x128xf32> to vector<128x128xf32>
    %cst_23 = arith.constant dense<0.000000e+00> : vector<8x128xf32>
    %42 = tpu.matmul %30, %41, %cst_23 {dimension_numbers = #tpu.dot_dimension_numbers<[1], [0], [0], [1], [0, 0, 1, 1], [], []>} : vector<8x128xf32>, vector<128x128xf32>, vector<8x128xf32> -> vector<8x128xf32>
    %43 = arith.addf %39, %42 : vector<8x128xf32>
    %c0_24 = arith.constant 0 : index
    %c0_25 = arith.constant 0 : index
    %44 = vector.load %arg10[%c0_24, %c0_25] : memref<8x128xf32, #tpu.memory_space<vmem>>, vector<8x128xf32>
    tpu.vector_store %arg10[%c0_24, %c0_25], %43 {strides = array<i32>} : memref<8x128xf32, #tpu.memory_space<vmem>>, vector<8x128xf32>,
    %c0_26 = arith.constant 0 : index
    %c0_27 = arith.constant 0 : index
    %45 = vector.load %arg8[%c0_26, %c0_27] : memref<8x1xf32, #tpu.memory_space<vmem>>, vector<8x1xf32>
    tpu.vector_store %arg8[%c0_26, %c0_27], %25 {strides = array<i32>} : memref<8x1xf32, #tpu.memory_space<vmem>>, vector<8x1xf32>,
    %c0_i32_28 = arith.constant 0 : i32
    %46 = arith.cmpi eq, %arg2, %c0_i32_28 : i32
    %47 = arith.extui %46 : i1 to i32
    %c0_i32_29 = arith.constant 0 : i32
    %48 = arith.cmpi ne, %47, %c0_i32_29 : i32
    scf.if %48 {
      %c0_30 = arith.constant 0 : index
      %c0_31 = arith.constant 0 : index
      %49 = vector.load %arg9[%c0_30, %c0_31] : memref<8x1xf32, #tpu.memory_space<vmem>>, vector<8x1xf32>
      %50 = tpu.reciprocal %49 {approx = true} : vector<8x1xf32> -> vector<8x1xf32>
      %c0_32 = arith.constant 0 : index
      %c0_33 = arith.constant 0 : index
      %51 = vector.load %arg10[%c0_32, %c0_33] : memref<8x128xf32, #tpu.memory_space<vmem>>, vector<8x128xf32>
      %52 = vector.broadcast %50 : vector<8x1xf32> to vector<8x128xf32>
      %53 = arith.mulf %51, %52 : vector<8x128xf32>
      %c0_34 = arith.constant 0 : index
      %c0_35 = arith.constant 0 : index
      %c0_36 = arith.constant 0 : index
      %54 = vector.load %arg7[%c0_34, %c0_35, %c0_36] : memref<1x8x128xf32, #tpu.memory_space<vmem>>, vector<1x8x128xf32>
      %55 = vector.shape_cast %54 : vector<1x8x128xf32> to vector<8x128xf32>
      %56 = vector.shape_cast %53 : vector<8x128xf32> to vector<1x8x128xf32>
      tpu.vector_store %arg7[%c0_34, %c0_35, %c0_36], %56 {strides = array<i32>} : memref<1x8x128xf32, #tpu.memory_space<vmem>>, vector<1x8x128xf32>,
    } else {
    }
    return
  }
  func.func @transform_0(%arg0: i32, %arg1: i32, %arg2: i32) -> (i32, i32, i32) {
    %c0_i32 = arith.constant 0 : i32
    %c0_i32_0 = arith.constant 0 : i32
    return %arg0, %arg1, %c0_i32 : i32, i32, i32
  }
  func.func @transform_1(%arg0: i32, %arg1: i32, %arg2: i32) -> (i32, i32, i32) {
    %c0_i32 = arith.constant 0 : i32
    %c0_i32_0 = arith.constant 0 : i32
    return %arg0, %arg2, %c0_i32 : i32, i32, i32
  }
  func.func @transform_2(%arg0: i32, %arg1: i32, %arg2: i32) -> (i32, i32, i32) {
    %c0_i32 = arith.constant 0 : i32
    %c0_i32_0 = arith.constant 0 : i32
    return %arg0, %arg2, %c0_i32 : i32, i32, i32
  }
  func.func @transform_3(%arg0: i32, %arg1: i32, %arg2: i32) -> (i32, i32, i32) {
    %c0_i32 = arith.constant 0 : i32
    return %arg0, %arg1, %arg2 : i32, i32, i32
  }
  func.func @transform_4(%arg0: i32, %arg1: i32, %arg2: i32) -> (i32, i32, i32) {
    %c0_i32 = arith.constant 0 : i32
    %c0_i32_0 = arith.constant 0 : i32
    return %arg0, %arg1, %c0_i32 : i32, i32, i32
  }
}

</mosaic_0001>

<bundles_post_ra>
// kernel: tpu_custom_call.1
= control target key start
LH: loop header
LB: loop body
LE: loop exit
PB: predicated region body
PF: predicated region fallthrough
CT: control target
= control target key end

     0   :  { %s1583_s0 = inlined_call_operand.hbm [shape: f32[2,8,128], index: 0, kind: input, shape index: {}]   ;;  %s1584_s1 = inlined_call_operand.hbm [shape: f32[2,128,128], index: 1, kind: input, shape index: {}]   ;;  %s1585_s2 = inlined_call_operand.hbm [shape: f32[2,128,128], index: 2, kind: input, shape index: {}]   ;;  %s1586_s3 = inlined_call_operand.vmem [shape: s8[2,8,128], index: 3, kind: input, shape index: {}]   ;;  %s1587_s4 = inlined_call_operand.hbm [shape: f32[2,8,128], index: 4, kind: output, shape index: {}]  }
   0x1   :  { %1597 = sst [smem:[#allocation20_spill]] %s1584_s1 }
   0x2   :  { %9 = vsyncpa [#allocation7], 0 }
   0x3   :  { %11 = vsyncpa [#allocation7 + $0x1], 0 }
   0x4   :  { %12 = vsyncpa [#allocation10], 0 }
   0x5   :  { %14 = vsyncpa [#allocation10 + $0x1], 0 }
   0x6   :  { %15 = vsyncpa [#allocation8], 0 }
   0x7   :  { %17 = vsyncpa [#allocation8 + $0x1], 0  ;;  %s1250_s15 = smov 0   ;;  %s1252_s16 = smov 0  }
   0x8   :  { %s1254_s17 = smov 0   ;;  %s1256_s18 = smov 0  }
   0x9   :  { %s1258_s19 = smov 0   ;;  %s1260_s20 = smov 0  }
   0xa LB: > { %1598 = sst [smem:[#allocation16_spill]] %s1200_s17  ;;  %s1281_s21 = sadd.s32 4294967295, %s1212_s20   ;;  %s1212_s20 = sphi %s1260_s20, %s23_s20   ;;  %s1208_s19 = sphi %s1258_s19, %s1626_s19   ;;  %s1204_s18 = sphi %s1256_s18, %s1625_s18   ;;  %s1200_s17 = sphi %s1254_s17, %s1624_s17   ;;  %s1196_s16 = sphi %s1252_s16, %s1623_s16   ;;  %s1192_s15 = sphi %s1250_s15, %s1622_s15  }
   0xb   : > { %s774_s22 = sadd.s32 4294967294, %s1212_s20   ;;  %s42_s23 = sadd.s32 1, %s1208_s19 }
   0xc   : > { %s51_s24 = sadd.s32 1, %s1200_s17  ;;  %p44_p0 = scmp.ge.s32.totalorder %s42_s23, 2 }
   0xd   : > { %p58_p1 = scmp.ne.s32.totalorder %s1200_s17, %s1196_s16  ;;  %p59_p2 = scmp.eq.s32.totalorder %s1212_s20, 0 }
   0xe   : > { %p64_p3 = scmp.ne.s32.totalorder %s1196_s16, %s1192_s15  ;;  %s1628_s23 = smov (%p44_p0, %s42_s23), 0 }
   0xf   : > { %1599 = sst [smem:[#allocation17_spill]] %s1628_s23  ;;  %p1293_p4 = por %p59_p2, %p58_p1 }
  0x10   : > { %p65_p5 = scmp.eq.s32.totalorder %s1281_s21, 0  ;;  %s46_s26 = ssub.s32 %s1208_s19, %s1628_s23 }
  0x11   : > { %p176_p6 = scmp.eq.s32.totalorder %s1281_s21, 1  ;;  %p49_p7 = scmp.eq.s32.totalorder %s46_s26, 0 }
  0x12   : > { %p1301_p8 = por %p65_p5, %p64_p3  ;;  %p182_p10 = scmp.eq.s32.totalorder %s774_s22, 1 }
  0x13   : > { %p1305_p9 = por %p176_p6, %p58_p1  ;;  %p971_p13 = scmp.lt.s32.totalorder %s1212_s20, 2 }
  0x14   : > { %s1601_s27 = scalar_select %p1301_p8, 1, 0 }
  0x15   : > { %s1602_s28 = scalar_select %p1305_p9, 1, 0 }
  0x16   : > { %s1310_s29 = scalar_select %p49_p7, %s1200_s17, %s51_s24  }
  0x17   : > { %p1312_p11 = por %p182_p10, %p64_p3  ;;  %s1319_s5 = sand.u32 1, %s1200_s17  }
  0x18   : > { %1603 = sst [smem:[#allocation18_spill]] %s1310_s29  ;;  %s221_s6 = sand.u32 1, %s1212_s20  }
  0x19   : > { %s1604_s30 = scalar_select %p1312_p11, 1, 0 }
  0x1a   : > { %s1588_s7 = sshll.u32 %s1319_s5, 7  ;;  %p1325_p0 = pnand %p971_p13, %p1293_p4 }
  0x1b   : > { %1605 = sst [smem:[#allocation19_spill]] %s1604_s30  ;;  %s795_s9 = sshll.u32 %s1208_s19, 11 }
  0x1c   : > { %s1606_s8 = scalar_select %p1325_p0, 1, 0 }
  0x1d   : > { %s1607_s1 = sld [smem:[#allocation20_spill]]  ;;  %s225_s13 = scalar_lea.vmem [#allocation9], %s1588_s7 }
  0x1e   : > { %s234_s14 = sshll.u32 %s225_s13, 4  ;;  %s1341_s22 = scalar_lea.sflag [#allocation10], %s221_s6  ;;  %s1339_s14 = int_to_ptr.vmem [resolvable:$true] %s234_s14 }
  0x1f   : > { %p1347_p2 = pneg %p1325_p0 }
  0x23   : > { %s1335_s12 = scalar_lea.hbm %s1607_s1, %s795_s9  ;;  %s1041_s11 = scalar_lea.hbm %s1607_s1, 4096 }
  0x24   : > { %s1036_s24 = scalar_lea.hbm %s1335_s12, 2048  ;;  %p1042_p5 = scmp.lt.u32.totalorder %s1335_s12, %s1607_s1 }
  0x25   : > { %p1037_p1 = scmp.ne.s32.totalorder %s1335_s12, %s1036_s24  ;;  %p1043_p6 = scmp.lt.u32.totalorder %s1041_s11, %s1036_s24 }
  0x26   : > { %p1045_p10 = scmp.lt.u32.totalorder %s1036_s24, %s1335_s12 }
  0x27   : > { %p1039_p3 = pnand %p1347_p2, %p1037_p1  ;;  %p1044_p7 = por %p1043_p6, %p1042_p5 }
  0x29   : > { %p1040_p4 = pneg %p1039_p3  ;;  %p1046_p13 = por %p1045_p10, %p1044_p7 }
  0x2b   : > { %p1047_p12 = pnand %p1046_p13, %p1040_p4 }
  0x2d   : > { %1050 = shalt.err (!%p1047_p12)
}
  0x2e   : > { %s1051_s6 = scalar_lea.vmem %s1339_s14, 2048  ;;  %s1214_s26 = smov [#allocation9]  }
  0x2f   : > { %p1052_p1 = scmp.ne.s32.totalorder %s1339_s14, %s1051_s6  ;;  %s1056_s10 = sshll.u32 %s1214_s26, 4  ;;  %s1057_s10 = int_to_ptr.vmem [resolvable:$false] %s1056_s10 }
  0x30   : > { %s1058_s7 = scalar_lea.vmem %s1057_s10, 4096  ;;  %p1059_p9 = scmp.lt.s32.totalorder %s1339_s14, %s1057_s10 }
  0x31   : > { %p1054_p3 = pnand %p1052_p1, %p1347_p2  ;;  %p1060_p8 = scmp.lt.s32.totalorder %s1058_s7, %s1051_s6 }
  0x33   : > { %p1055_p11 = pneg %p1054_p3  ;;  %p1061_p5 = por %p1060_p8, %p1059_p9 }
  0x35   : > { %p1062_p6 = pnand %p1061_p5, %p1055_p11 }
  0x37   : > { %1065 = shalt.err (!%p1062_p6)
}
  0x38   : > { %s1594_s24 = smov 128   ;;  %s1216_s11 = smov 8  }
  0x39   : > { %963 = dma.hbm_to_vmem [thread:$0]  (!%p1325_p0), %s1335_s12, 2048, %s1339_s14, %s1341_s22, %s1594_s24, %s1594_s24, %s1216_s11  }
  0x3a   : > { %s1379_s26 = scalar_lea.hbm %s1585_s2, %s795_s9  ;;  %p785_p8 = scmp.ge.s32.totalorder %s1212_s20, 1 }
  0x3b   : > { %s1609_s10 = sshll.u32 %s1319_s5, 7  ;;  %p278_p9 = scmp.lt.s32.totalorder %s1212_s20, 3 }
  0x3c   : > { %s248_s7 = scalar_lea.vmem [#allocation11], %s1609_s10  ;;  %s777_s29 = sshll.u32 %s1319_s5, 3 }
  0x3d   : > { %s257_s1 = sshll.u32 %s248_s7, 4  ;;  %p1385_p11 = pnand %p785_p8, %p278_p9  ;;  %s1396_s1 = int_to_ptr.vmem [resolvable:$true] %s257_s1 }
  0x3e   : > { %s778_s17 = sshll.u32 %s1208_s19, 7  ;;  %s206_s9 = scalar_lea.vmem [#allocation6], %s777_s29 }
  0x3f   : > { %s1610_s23 = scalar_select %p1385_p11, 1, 0 }
  0x40   : > { %s1394_s14 = scalar_lea.hbm %s1583_s0, %s778_s17  ;;  %s214_s13 = sshll.u32 %s206_s9, 4  ;;  %s215_s13 = int_to_ptr.vmem [resolvable:$true] %s214_s13 }
  0x41   : > { %s203_s6 = scalar_lea.sflag [#allocation7], %s1319_s5  ;;  %s1066_s10 = scalar_lea.hbm %s1394_s14, 128 }
  0x42   : > { %p1067_p12 = scmp.ne.s32.totalorder %s1394_s14, %s1066_s10  ;;  %s1071_s17 = scalar_lea.hbm %s1583_s0, 256 }
  0x43   : > { %p1072_p10 = scmp.lt.u32.totalorder %s1394_s14, %s1583_s0  ;;  %p1073_p13 = scmp.lt.u32.totalorder %s1071_s17, %s1066_s10 }
  0x44   : > { %p1069_p4 = pnand %p1067_p12, %p1347_p2  ;;  %p1075_p3 = scmp.lt.u32.totalorder %s1066_s10, %s1394_s14 }
  0x45   : > { %p1074_p1 = por %p1073_p13, %p1072_p10 }
  0x46   : > { %p1070_p7 = pneg %p1069_p4 }
  0x47   : > { %p1076_p5 = por %p1075_p3, %p1074_p1 }
  0x49   : > { %p1077_p6 = pnand %p1076_p5, %p1070_p7 }
  0x4b   : > { %1080 = shalt.err (!%p1077_p6)
}
  0x4c   : > { %s1081_s29 = scalar_lea.vmem %s215_s13, 128  ;;  %s1217_s5 = smov [#allocation6]  }
  0x4d   : > { %p1082_p8 = scmp.ne.s32.totalorder %s215_s13, %s1081_s29  ;;  %s1086_s9 = sshll.u32 %s1217_s5, 4  ;;  %s1087_s9 = int_to_ptr.vmem [resolvable:$false] %s1086_s9 }
  0x4e   : > { %s1088_s24 = scalar_lea.vmem %s1087_s9, 256  ;;  %p1089_p4 = scmp.lt.s32.totalorder %s215_s13, %s1087_s9 }
  0x4f   : > { %p1084_p9 = pnand %p1082_p8, %p1347_p2  ;;  %p1090_p11 = scmp.lt.s32.totalorder %s1088_s24, %s1081_s29 }
  0x51   : > { %p1085_p12 = pneg %p1084_p9  ;;  %p1091_p0 = por %p1090_p11, %p1089_p4 }
  0x53   : > { %p1092_p10 = pnand %p1091_p0, %p1085_p12 }
  0x55   : > { %1095 = shalt.err (!%p1092_p10)
}
  0x56   : > { %p1611_p13 = scmp.ne.s32.totalorder %s1606_s8, 0  ;;  %s1096_s10 = scalar_lea.hbm %s1379_s26, 2048 }
  0x57   : > { %p1097_p7 = scmp.ne.s32.totalorder %s1379_s26, %s1096_s10  ;;  %s1101_s30 = scalar_lea.hbm %s1585_s2, 4096 }
  0x58   : > { %960 = dma.hbm_to_vmem [thread:$0]  (!%p1611_p13), %s1394_s14, 128, %s215_s13, %s203_s6  }
  0x59   : > { %p1099_p1 = pnand %p1097_p7, %p1347_p2  ;;  %p1102_p0 = scmp.lt.u32.totalorder %s1379_s26, %s1585_s2 }
  0x5a   : > { %p1103_p11 = scmp.lt.u32.totalorder %s1101_s30, %s1096_s10  ;;  %p1105_p6 = scmp.lt.u32.totalorder %s1096_s10, %s1379_s26 }
  0x5b   : > { %p1100_p3 = pneg %p1099_p1 }
  0x5c   : > { %p1104_p5 = por %p1103_p11, %p1102_p0 }
  0x5e   : > { %p1106_p8 = por %p1105_p6, %p1104_p5 }
  0x60   : > { %p1107_p9 = pnand %p1106_p8, %p1100_p3 }
  0x62   : > { %1110 = shalt.err (!%p1107_p9)
}
  0x63   : > { %s1111_s14 = scalar_lea.vmem %s1396_s1, 2048  ;;  %s1218_s13 = smov [#allocation11]  }
  0x64   : > { %p1112_p12 = scmp.ne.s32.totalorder %s1396_s1, %s1111_s14  ;;  %s1116_s6 = sshll.u32 %s1218_s13, 4  ;;  %s1117_s6 = int_to_ptr.vmem [resolvable:$false] %s1116_s6 }
  0x65   : > { %s1118_s5 = scalar_lea.vmem %s1117_s6, 4096  ;;  %p1119_p7 = scmp.lt.s32.totalorder %s1396_s1, %s1117_s6 }
  0x66   : > { %p1114_p4 = pnand %p1112_p12, %p1347_p2  ;;  %p1120_p1 = scmp.lt.s32.totalorder %s1118_s5, %s1111_s14 }
  0x68   : > { %p1115_p10 = pneg %p1114_p4  ;;  %p1121_p0 = por %p1120_p1, %p1119_p7 }
  0x6a   : > { %p1122_p11 = pnand %p1121_p0, %p1115_p10 }
  0x6c   : > { %1125 = shalt.err (!%p1122_p11)
}
  0x6d   : > { %s1612_s9 = smov 128   ;;  %p1613_p2 = scmp.ne.s32.totalorder %s1610_s23, 0 }
  0x6e   : > { %966 = dma.hbm_to_vmem [thread:$0]  (!%p1611_p13), %s1379_s26, 2048, %s1396_s1, %s1341_s22, %s1612_s9, %s1612_s9, %s1216_s11  }
  0x6f   : > { %282 = sbr.rel (%p1613_p2) target bundleno = 999 (0x3e7), region = 36  ;;  %s1444_s25 = sand.u32 (!%p1613_p2), 1, %s1196_s16  }
  0x70   : > { %s786_s24 = sshll.u32 (!%p1613_p2), %s1444_s25, 3  ;;  %s285_s10 = scalar_lea.sflag (!%p1613_p2), [#allocation7], %s1444_s25 }
  0x71   : > { %s1450_s8 = scalar_lea.vmem (!%p1613_p2), [#allocation6], %s786_s24  ;;  %p1614_p3 = scmp.ne.s32.totalorder (!%p1613_p2), %s1601_s27, 0 }
  0x76   : > { %1179 = dma.done.wait (%p1614_p3), %s285_s10, 128  }
  0x77   : > { %1181 = vsyncadd (%p1614_p3), %s285_s10, 4294967168  ;;  %s293_s1 = sand.u32 1, %s1281_s21   ;;  %s787_s23 = sshll.u32 %s1444_s25, 7 }
  0x78   : > { %s294_s22 = scalar_lea.sflag [#allocation10], %s293_s1  ;;  %s1460_s11 = scalar_lea.vmem [#allocation9], %s787_s23 }
  0x79   : > { %1183 = dma.done.wait (%p1614_p3), %s294_s22, 4096  }
  0x7a   : > { %1185 = vsyncadd (%p1614_p3), %s294_s22, 4294963200  ;;  %vm369_vm0 = vcmask 7168   ;;  %v1219_v0 = vmov 0.0|0.0   ;;  %v1220_v1 = vmov -inf   ;;  %v1221_v2 = vmov 0.0   ;;  %v377_v3 = vld [vmem:[%s1460_s11] sm:$0xff] }
  0x7b   : > { %901 = vmatprep.subr.bf16.mxu0 %v1219_v0  ;;  %370 = vst.msk [vmem:[#allocation2] sm:$0xff] %vm369_vm0, %v1220_v1  ;;  %371 = vst.msk [vmem:[#allocation3] sm:$0xff] %vm369_vm0, %v1221_v2  ;;  %925 = vmatprep.subr.bf16.mxu1 %v1219_v0  ;;  %vm1222_vm1 = vmmov 0   ;;  %v378_v4 = vld [vmem:[%s1460_s11 + $0x8] sm:$0xff]  ;;  %v379_v6 = vld [vmem:[%s1460_s11 + $0x10] sm:$0xff]  ;;  %v1223_v29 = vmov 0   ;;  %v471_v32 = vlaneseq }
  0x7c   : > { %863 = vmatprep.mubr.msk.f32.mxu0 %vm1222_vm1, %v1221_v2  ;;  %898 = vmatprep.mubr.msk.f32.mxu1 %vm1222_vm1, %v1221_v2  ;;  %v902_v5 = vpack.c.bf16 %v378_v4, %v377_v3  ;;  %v380_v7 = vld [vmem:[%s1460_s11 + $0x18] sm:$0xff]  ;;  %v381_v9 = vld [vmem:[%s1460_s11 + $0x20] sm:$0xff]  ;;  %v382_v10 = vld [vmem:[%s1460_s11 + $0x28] sm:$0xff]  ;;  %p353_p13 = scmp.lt.s32.totalorder %s1204_s18, 1  ;;  %s1501_s30 = scalar_lea.vmem [#allocation11], %s787_s23 }
  0x7d   : > { %v905_v8 = vpack.c.bf16 %v380_v7, %v379_v6  ;;  %v908_v11 = vpack.c.bf16 %v382_v10, %v381_v9  ;;  %v383_v12 = vld [vmem:[%s1460_s11 + $0x30] sm:$0xff]  ;;  %v384_v13 = vld [vmem:[%s1460_s11 + $0x38] sm:$0xff]  ;;  %v385_v15 = vld [vmem:[%s1460_s11 + $0x40] sm:$0xff]  ;;  %1028 = vset.pattern.permute.xlu0 %v1223_v29  ;;  %1029 = vset.pattern.permute.xlu1 %v1223_v29  ;;  %v472_v34 = vand.u32 127, %v471_v32  ;;  %s792_s12 = sshll.u32 %s1204_s18, 7  ;;  %s350_s29 = scalar_lea.vmem [#allocation12], %s786_s24 }
  0x7e   : > { %903 = vmatpush3.bf16.xpose.msra.mxu0 %v902_v5  ;;  %v911_v14 = vpack.c.bf16 %v384_v13, %v383_v12  ;;  %v386_v16 = vld [vmem:[%s1460_s11 + $0x48] sm:$0xff]  ;;  %v387_v18 = vld [vmem:[%s1460_s11 + $0x50] sm:$0xff]  ;;  %v388_v19 = vld [vmem:[%s1460_s11 + $0x58] sm:$0xff]  ;;  %s354_s21 = scalar_select %p353_p13, %s1204_s18, 1 }
  0x7f   : > { %904 = vmatprep.subr.bf16.mxu0 %v1219_v0  ;;  %v914_v17 = vpack.c.bf16 %v386_v16, %v385_v15  ;;  %v917_v20 = vpack.c.bf16 %v388_v19, %v387_v18  ;;  %v389_v21 = vld [vmem:[%s1460_s11 + $0x60] sm:$0xff]  ;;  %v390_v22 = vld [vmem:[%s1460_s11 + $0x68] sm:$0xff]  ;;  %v391_v24 = vld [vmem:[%s1460_s11 + $0x70] sm:$0xff]  ;;  %vm475_vm4 = vcmp.lt.s32.totalorder %v472_v34, 8  ;;  %s623_s14 = sshll.u32 %s350_s29, 4  ;;  %s1534_s5 = scalar_lea.hbm %s1587_s4, %s792_s12  ;;  %s1536_s14 = int_to_ptr.vmem [resolvable:$true] %s623_s14 }
  0x80   : > { %v920_v23 = vpack.c.bf16 %v390_v22, %v389_v21  ;;  %v392_v25 = vld [vmem:[%s1460_s11 + $0x78] sm:$0xff]  ;;  %s790_s27 = sshll.u32 %s354_s21, 1  ;;  %v506_v40 = vld [vmem:[%s1501_s30] sm:$0xff]  ;;  %v507_v41 = vld [vmem:[%s1501_s30 + $0x8] sm:$0xff]  ;;  %s609_s9 = scalar_lea.sflag [#allocation8], %s1444_s25 }
  0x81   : > { %v923_v26 = vpack.c.bf16 %v392_v25, %v391_v24  ;;  %v373_v27 = vld [vmem:[%s1450_s8] sm:$0xff]  ;;  %s362_s17 = scalar_lea.vmem %s1586_s3, %s790_s27  ;;  %v926_v43 = vpack.c.bf16 %v507_v41, %v506_v40  ;;  %v510_v46 = vld [vmem:[%s1501_s30 + $0x20] sm:$0xff]  ;;  %v511_v47 = vld [vmem:[%s1501_s30 + $0x28] sm:$0xff]  ;;  %s1126_s10 = scalar_lea.vmem %s1536_s14, 128 }
  0x82   : > { %v374_v28 = vmul.f32 0.17677669, %v373_v27  ;;  %v463_v30 = vld [vmem:[%s362_s17] sm:$0x3]  ;;  %v508_v42 = vld [vmem:[%s1501_s30 + $0x10] sm:$0xff]  ;;  %v509_v44 = vld [vmem:[%s1501_s30 + $0x18] sm:$0xff]  ;;  %v932_v48 = vpack.c.bf16 %v511_v47, %v510_v46  ;;  %p1127_p5 = scmp.ne.s32.totalorder %s1536_s14, %s1126_s10 }
  0x83   : > { %vm464_vm2 = vnez %v463_v30  ;;  %927 = vmatpush3.bf16.msra.mxu1 %v926_v43  ;;  %v929_v45 = vpack.c.bf16 %v509_v44, %v508_v42  ;;  %v512_v49 = vld [vmem:[%s1501_s30 + $0x30] sm:$0xff]  ;;  %v513_v50 = vld [vmem:[%s1501_s30 + $0x38] sm:$0xff]  ;;  %v477_v52 = vld [vmem:[#allocation2] sm:$0xff]  ;;  %p1615_p6 = scmp.ne.s32.totalorder %s1602_s28, 0  ;;  %s1224_s18 = smov [#allocation12]  }
  0x84   : > { %v466_v31 = vsel %vm464_vm2, 16843009, %v1223_v29  ;;  %928 = vmatprep.subr.bf16.mxu1 %v1219_v0  ;;  %v935_v51 = vpack.c.bf16 %v513_v50, %v512_v49  ;;  %v514_v54 = vld [vmem:[%s1501_s30 + $0x40] sm:$0xff]  ;;  %v515_v55 = vld [vmem:[%s1501_s30 + $0x48] sm:$0xff]  ;;  %v516_v59 = vld [vmem:[%s1501_s30 + $0x50] sm:$0xff]  ;;  %s1130_s24 = sshll.u32 %s1224_s18, 4  ;;  %s1131_s24 = int_to_ptr.vmem [resolvable:$false] %s1130_s24 }
  0x85   : > { %v467_v33 = vunpack.c.0.s8 %v466_v31  ;;  %v938_v57 = vpack.c.bf16 %v515_v55, %v514_v54  ;;  %v517_v60 = vld [vmem:[%s1501_s30 + $0x58] sm:$0xff]  ;;  %v518_v62 = vld [vmem:[%s1501_s30 + $0x60] sm:$0xff]  ;;  %v519_v63 = vld [vmem:[%s1501_s30 + $0x68] sm:$0xff]  ;;  %p1128_p8 = pnand %p1127_p5, %p1615_p6  ;;  %s1132_s8 = scalar_lea.vmem %s1131_s24, 256 }
  0x86   : > { %906 = vmatpush3.bf16.xpose.msra.mxu0 %v905_v8  ;;  %v941_v61 = vpack.c.bf16 %v517_v60, %v516_v59  ;;  %v944_v1 = vpack.c.bf16 %v519_v63, %v518_v62  ;;  %v520_v2 = vld [vmem:[%s1501_s30 + $0x70] sm:$0xff]  ;;  %v521_v3 = vld [vmem:[%s1501_s30 + $0x78] sm:$0xff]  ;;  %p1133_p12 = scmp.lt.s32.totalorder %s1536_s14, %s1131_s24  ;;  %p1134_p4 = scmp.lt.s32.totalorder %s1132_s8, %s1126_s10 }
  0x87   : > { %907 = vmatprep.subr.bf16.mxu0 %v1219_v0  ;;  %vm468_vm3 = vcmp.ne.s32.totalorder %v467_v33, 0  ;;  %930 = vmatpush3.bf16.msra.mxu1 %v929_v45  ;;  %v947_v4 = vpack.c.bf16 %v521_v3, %v520_v2  ;;  %p1129_p9 = pneg %p1128_p8 }
  0x88   : > { %931 = vmatprep.subr.bf16.mxu1 %v1219_v0  ;;  %p1135_p10 = por %p1134_p4, %p1133_p12 }
  0x8a   : > { %p1136_p7 = pnand %p1135_p10, %p1129_p9 }
  0x8b   : > { %933 = vmatpush3.bf16.msra.mxu1 %v932_v48 }
  0x8c   : > { %934 = vmatprep.subr.bf16.mxu1 %v1219_v0 }
  0x8e   : > { %909 = vmatpush3.bf16.xpose.msra.mxu0 %v908_v11  ;;  %v492_v11 = vld [vmem:[#allocation3] sm:$0xff] }
  0x8f   : > { %910 = vmatprep.subr.bf16.mxu0 %v1219_v0  ;;  %936 = vmatpush3.bf16.msra.mxu1 %v935_v51 }
  0x90   : > { %937 = vmatprep.subr.bf16.mxu1 %v1219_v0 }
  0x93   : > { %939 = vmatpush3.bf16.msra.mxu1 %v938_v57 }
  0x94   : > { %940 = vmatprep.subr.bf16.mxu1 %v1219_v0 }
  0x96   : > { %912 = vmatpush3.bf16.xpose.msra.mxu0 %v911_v14 }
  0x97   : > { %913 = vmatprep.subr.bf16.mxu0 %v1219_v0  ;;  %942 = vmatpush3.bf16.msra.mxu1 %v941_v61 }
  0x98   : > { %943 = vmatprep.subr.bf16.mxu1 %v1219_v0 }
  0x9b   : > { %945 = vmatpush3.bf16.msra.mxu1 %v944_v1 }
  0x9c   : > { %946 = vmatprep.subr.bf16.mxu1 %v1219_v0 }
  0x9e   : > { %915 = vmatpush3.bf16.xpose.msra.mxu0 %v914_v17 }
  0x9f   : > { %916 = vmatprep.subr.bf16.mxu0 %v1219_v0  ;;  %948 = vmatpush3.bf16.msra.mxu1 %v947_v4 }
  0xa6   : > { %918 = vmatpush3.bf16.xpose.msra.mxu0 %v917_v20 }
  0xa7   : > { %919 = vmatprep.subr.bf16.mxu0 %v1219_v0 }
  0xae   : > { %921 = vmatpush3.bf16.xpose.msra.mxu0 %v920_v23 }
  0xaf   : > { %922 = vmatprep.subr.bf16.mxu0 %v1219_v0 }
  0xb6   : > { %924 = vmatpush3.bf16.xpose.msra.mxu0 %v923_v26 }
  0xbd   : > { %864 = vmatmul.mubr.f32.vlgmr.msra.gmra.mrb[0].mxu0 %v374_v28 }
 0x190   : > { %v459_v35 = vpop.f32.mrb[0].mxu0 }
 0x191   : > { %v465_v36 = vadd.f32 -1e+09, %v459_v35  ;;  %v865_v37 = vpop.f32.mrb[1].mxu0 }
 0x193   : > { %v469_v38 = vsel %vm468_vm3, %v465_v36, %v459_v35 }
 0x194   : > { %v476_v39 = vsel %vm475_vm4, %v469_v38, -1e+30 }
 0x195   : > { %478 = vmax.xlane.f32.xlu0 %v476_v39 }
 0x222   : > { %v479_v53 = vpop.xlane.xlu0 %478 }
 0x223   : > { %v480_v56 = vmax.f32 %v477_v52, %v479_v53 }
 0x225   : > { %v481_v58 = vsub.f32 %v477_v52, %v480_v56  ;;  %594 = vst.msk [vmem:[#allocation2] sm:$0xff] %vm369_vm0, %v480_v56  ;;  %486 = vperm.xlu0 %1028, %v480_v56  }
 0x227   : > { %v482_v9 = vmul.f32 1.442695, %v481_v58 }
 0x2a4   : > { %v487_v5 = vpop.permute.xlu0 %486 }
 0x2a5   : > { %v489_v6 = vsub.f32 %v476_v39, %v487_v5 }
 0x2a7   : > { %v490_v7 = vmul.f32 1.442695, %v489_v6 }
 0x2a9   : > { %1030 = vpow2.f32 %v490_v7 }
 0x2aa   : > { %1032 = vpow2.f32 %v482_v9 }
 0x2b3   : > { %v1031_v8 = vpop.eup %1030 }
 0x2b4   : > { %494 = vadd.xlane.f32.xlu1 %v1031_v8  ;;  %899 = vmatmul.mubr.f32.vlgmr.msra.gmra.mrb[0].mxu1 %v1031_v8  ;;  %v1033_v10 = vpop.eup %1032 }
 0x2b5   : > { %v493_v12 = vmul.f32 %v1033_v10, %v492_v11 }
 0x2c5   : > { %502 = vperm.xlu1 %1029, %v1033_v10  }
 0x341   : > { %v495_v13 = vpop.xlane.xlu1 %494 }
 0x342   : > { %v496_v14 = vadd.f32 %v495_v13, %v493_v12 }
 0x344   : > { %498 = vst.msk [vmem:[#allocation3] sm:$0xff] %vm369_vm0, %v496_v14 }
 0x345   : > { %v503_v18 = vpop.permute.xlu1 %502 }
 0x346   : > { %v505_v19 = vmul.f32 0.0, %v503_v18 }
 0x34b   : > { %v598_v0 = vld [vmem:[#allocation3] sm:$0xff] }
 0x34c   : > { %1034 = vrcp.f32 %v598_v0 }
 0x356   : > { %v1035_v15 = vpop.eup %1034 }
 0x357   : > { %603 = vperm.xlu1 %1029, %v1035_v15  }
 0x387   : > { %v588_v16 = vpop.f32.mrb[0].mxu1 }
 0x388   : > { %v900_v17 = vpop.f32.mrb[1].mxu1  ;;  %v592_v20 = vadd.f32 %v588_v16, %v505_v19 }
 0x3d6   : > { %v604_v21 = vpop.permute.xlu1 %603 }
 0x3d7   : > { %v606_v22 = vmul.f32 %v604_v21, %v592_v20 }
 0x3d9   : > { %607 = vst [vmem:[%s350_s29] sm:$0xff] %v606_v22 }
 0x3da   : > { %1139 = shalt.err (!%p1136_p7)
}
 0x3db   : > { %s1140_s25 = scalar_lea.hbm %s1534_s5, 128  ;;  %s1144_s22 = scalar_lea.hbm %s1587_s4, 256 }
 0x3dc   : > { %p1141_p1 = scmp.ne.s32.totalorder %s1534_s5, %s1140_s25  ;;  %p1145_p2 = scmp.lt.u32.totalorder %s1534_s5, %s1587_s4 }
 0x3dd   : > { %p1146_p3 = scmp.lt.u32.totalorder %s1144_s22, %s1140_s25  ;;  %p1148_p5 = scmp.lt.u32.totalorder %s1140_s25, %s1534_s5 }
 0x3de   : > { %p1142_p0 = pnand %p1141_p1, %p1615_p6 }
 0x3df   : > { %p1147_p13 = por %p1146_p3, %p1145_p2 }
 0x3e0   : > { %p1143_p11 = pneg %p1142_p0 }
 0x3e1   : > { %p1149_p8 = por %p1148_p5, %p1147_p13 }
 0x3e3   : > { %p1150_p9 = pnand %p1149_p8, %p1143_p11 }
 0x3e5   : > { %1153 = shalt.err (!%p1150_p9)
}
 0x3e6   : > { %955 = dma.vmem_to_hbm [thread:$0]  (%p1615_p6), %s1536_s14, 128, %s1534_s5, %s609_s9  }
 0x3e7 PF: > { %s1616_s27 = sld [smem:[#allocation19_spill]]  ;;  %s635_s26 = sand.u32 1, %s1192_s15  }
 0x3e8   : > { %p1618_p4 = scmp.ge.s32.totalorder %s1212_s20, 2  ;;  %s636_s7 = scalar_lea.sflag [#allocation8], %s635_s26 }
 0x3ed   : > { %p1617_p12 = scmp.ne.s32.totalorder %s1616_s27, 0 }
 0x3ef   : > { %p968_p10 = pnand %p1618_p4, %p1617_p12 }
 0x3f1   : > { %1187 = dma.done.wait (!%p968_p10), %s636_s7, 128  }
 0x3f2   : > { %1189 = vsyncadd (!%p968_p10), %s636_s7, 4294967168  ;;  %s23_s20 = sadd.s32 1, %s1212_s20   ;;  %s1619_s17 = sld [smem:[#allocation16_spill]] }
 0x3f3   : > { %p20_p7 = scmp.ge.s32.totalorder %s23_s20, 4   ;;  %s1620_s28 = sld [smem:[#allocation18_spill]] }
 0x3f4   : > { %s1621_s30 = sld [smem:[#allocation17_spill]]  ;;  %s1622_s15 = smov %s1196_s16 }
 0x3f5   : > { %s1625_s18 = smov %s1208_s19  ;;  %22 = sbr.rel (!%p20_p7) target bundleno = 10 (0xa), region = 116 }
 0x3f8   : > { %s1623_s16 = smov %s1619_s17 }
 0x3f9   : > { %s1624_s17 = smov %s1620_s28 }
 0x3fa   : > { %s1626_s19 = smov %s1621_s30 }
 0x3fc   :  { %641 = vsyncpa [#allocation7], 1 }
 0x3fd   :  { %643 = vsyncpa [#allocation7 + $0x1], 1 }
 0x3fe   :  { %644 = vsyncpa [#allocation10], 1 }
 0x3ff   :  { %646 = vsyncpa [#allocation10 + $0x1], 1 }
 0x400   :  { %647 = vsyncpa [#allocation8], 1 }
 0x401   :  { %649 = vsyncpa [#allocation8 + $0x1], 1 }

</bundles_post_ra>
